<compile_context>
chip_gen: v6e
topology: v6e:2x2x1
jax: 0.10.0
libtpu: 0.0.40
codegen_flags: <defaults>
</compile_context>

<pallas_src>
import jax
import jax.numpy as jnp
from jax.experimental import pallas as pl
from jax.experimental.pallas import tpu as pltpu


_LANE = 128
_SUB = 8
_TARGET_TILE_F32 = 2 * 1024 * 1024   # ~2 MiB f32 working set per input tile


def _ceil_to(x, m):
    return -(-x // m) * m


def _pick_tiles(R, HW, itemsize):
    """Choose (rows_tile, thw, R_pad, hw_pad) for the flattened (R, HW) problem."""
    hw128 = _ceil_to(HW, _LANE)

    # --- rows per tile (sublane axis) ---
    if R <= _SUB:
        rows_tile = R                           # full-extent block (< 8 allowed)
    elif hw128 * _SUB * 4 >= _TARGET_TILE_F32 // 4:
        rows_tile = _SUB                        # 8 rows already give >=512KiB DMAs
    else:
        # Small spatial extent: grow the row tile so DMAs stay large, but keep
        # >= 2 row programs when possible (the row axis is the "parallel" one,
        # so it is what feeds both v7x TensorCores).
        rows_fit = max(_SUB, (_TARGET_TILE_F32 // (hw128 * 4)) // _SUB * _SUB)
        rows_tile = min(_ceil_to(R, _SUB), rows_fit)
        if _ceil_to(R, _SUB) >= 2 * _SUB:
            rows_tile = min(rows_tile, max(_SUB, _ceil_to(-(-R // 2), _SUB)))

    # --- spatial (lane) tile: multiple of 128, same f32 budget ---
    thw = max(_LANE, (_TARGET_TILE_F32 // (rows_tile * 4)) // _LANE * _LANE)
    thw = min(thw, hw128)

    R_pad = R if rows_tile == R else _ceil_to(R, rows_tile)
    hw_pad = _ceil_to(HW, thw)

    # Never collapse a non-trivial problem to a single grid step (a (1,1) grid
    # has no prefetch/writeback overlap); split the spatial axis in two instead.
    if (R_pad == rows_tile and hw_pad == thw
            and 2 * R_pad * hw_pad * itemsize > (1 << 20) and hw128 >= 2 * _LANE):
        thw = _ceil_to(-(-hw_pad // 2), _LANE)
        hw_pad = _ceil_to(HW, thw)

    return rows_tile, thw, R_pad, hw_pad


def _vmem_limit_bytes():
    try:
        cap = int(pltpu.get_tpu_info().vmem_capacity_bytes)
    except Exception:
        cap = 64 * 1024 * 1024              # assume the smallest (v7x per-TC VMEM)
    # Tiles are <= ~2 MiB f32-equivalent, so 48 MiB is ample everywhere and
    # stays within 3/4 of physical VMEM on every generation.
    return max(32 * 1024 * 1024, min(48 * 1024 * 1024, (3 * cap) // 4))


def _mdice_kernel(x_ref, t_ref, dice_ref, inter_ref, sxt_ref):
    # x_ref, t_ref : (rows_tile, thw) input tiles, native dtype (upcast in VMEM)
    # dice_ref     : (rows_tile, 1) f32 per-row dice output
    # inter / sxt  : (rows_tile, 1) f32 VMEM accumulators
    j = pl.program_id(1)

    @pl.when(j == 0)
    def _():
        inter_ref[...] = jnp.zeros_like(inter_ref)
        sxt_ref[...] = jnp.zeros_like(sxt_ref)

    x = x_ref[...].astype(jnp.float32)
    t = t_ref[...].astype(jnp.float32)

    inter_ref[...] += jnp.sum(x * t, axis=1, keepdims=True)
    sxt_ref[...] += jnp.sum(x + t, axis=1, keepdims=True)

    @pl.when(j == pl.num_programs(1) - 1)
    def _():
        smooth = jnp.float32(1.0)
        dice_ref[...] = 2.0 * (inter_ref[...] + smooth) / (sxt_ref[...] + smooth)


def multiclass_dice_loss(inp, tgt, weights=None):
    """Matches MulticlassDiceLoss.forward: sum_i weights[i] * DiceLoss(inp[:, i], tgt[:, i])."""
    N, C = int(inp.shape[0]), int(inp.shape[1])
    HW = 1
    for d in inp.shape[2:]:
        HW *= int(d)
    R = N * C

    if weights is None:
        weights = jnp.ones((C,), dtype=jnp.float32)
    weights = jnp.asarray(weights, dtype=jnp.float32)

    # Free, contiguous reshape — no transpose, no wrapper dtype cast.
    x = inp.reshape(R, HW)
    t = tgt.reshape(R, HW)

    itemsize = max(jnp.dtype(inp.dtype).itemsize, jnp.dtype(tgt.dtype).itemsize)
    rows_tile, thw, R_pad, hw_pad = _pick_tiles(R, HW, itemsize)

    if R_pad != R or hw_pad != HW:
        # Zero padding is exact for sum(x*t) and sum(x+t); padded rows' dice
        # values are discarded below.
        x = jnp.pad(x, ((0, R_pad - R), (0, hw_pad - HW)))
        t = jnp.pad(t, ((0, R_pad - R), (0, hw_pad - HW)))

    grid = (R_pad // rows_tile, hw_pad // thw)

    dice = pl.pallas_call(
        _mdice_kernel,
        out_shape=jax.ShapeDtypeStruct((R_pad, 1), jnp.float32),
        grid_spec=pltpu.PrefetchScalarGridSpec(
            num_scalar_prefetch=0,
            grid=grid,
            in_specs=[
                pl.BlockSpec((rows_tile, thw), lambda r, j: (r, j)),
                pl.BlockSpec((rows_tile, thw), lambda r, j: (r, j)),
            ],
            out_specs=pl.BlockSpec((rows_tile, 1), lambda r, j: (r, 0)),
            scratch_shapes=[
                pltpu.VMEM((rows_tile, 1), jnp.float32),
                pltpu.VMEM((rows_tile, 1), jnp.float32),
            ],
        ),
        compiler_params=pltpu.CompilerParams(
            dimension_semantics=("parallel", "arbitrary"),
            vmem_limit_bytes=_vmem_limit_bytes(),
        ),
    )(x, t)

    dice = dice[:R, 0].reshape(N, C)                    # (N, C) per-sample/class dice
    per_class_loss = 1.0 - jnp.sum(dice, axis=0) / N    # (C,)
    return jnp.sum(weights * per_class_loss)

# TODO(synk): if callers can pass int8 one-hot targets (or the raw label map),
# the target HBM stream shrinks 4x (or ~Cx); the kernel already upcasts in VMEM.
# TODO(synk): for N*C <= 8 the "parallel" axis has a single program, so v7x's
# second TensorCore idles; a spatial-split partial-sum variant would cover that.


def _reference(inp, tgt, weights=None):
    # pure-JAX reference mirroring the PyTorch module exactly
    N, C = inp.shape[0], inp.shape[1]
    if weights is None:
        weights = jnp.ones((C,), dtype=jnp.float32)
    total = jnp.float32(0.0)
    for i in range(C):
        xi = inp[:, i].reshape(N, -1).astype(jnp.float32)
        ti = tgt[:, i].reshape(N, -1).astype(jnp.float32)
        inter = jnp.sum(xi * ti, axis=1)
        loss = 2.0 * (inter + 1.0) / (jnp.sum(xi, axis=1) + jnp.sum(ti, axis=1) + 1.0)
        loss = 1.0 - jnp.sum(loss) / N
        total = total + weights[i] * loss
    return total


if __name__ == "__main__":
    key = jax.random.PRNGKey(0)
    k1, k2, k3, k4 = jax.random.split(key, 4)

    # Case 1: aligned shapes (no padding path).
    N, C, H, W = 2, 4, 16, 16
    inp = jax.nn.sigmoid(jax.random.normal(k1, (N, C, H, W), dtype=jnp.float32))
    labels = jax.random.randint(k2, (N, H, W), 0, C)
    tgt = jax.nn.one_hot(labels, C, dtype=jnp.float32).transpose(0, 3, 1, 2)  # (N, C, H, W)
    loss = jax.block_until_ready(multiclass_dice_loss(inp, tgt))
    ref = jax.block_until_ready(_reference(inp, tgt))
    assert jnp.allclose(loss, ref, rtol=1e-5, atol=1e-5), (loss, ref)

    # Case 2: non-128-multiple spatial size and N*C not a multiple of 8
    # (exercises the zero-padding path and multiple row programs).
    N2, C2, H2, W2 = 3, 5, 10, 13
    inp2 = jax.nn.sigmoid(jax.random.normal(k3, (N2, C2, H2, W2), dtype=jnp.float32))
    labels2 = jax.random.randint(k4, (N2, H2, W2), 0, C2)
    tgt2 = jax.nn.one_hot(labels2, C2, dtype=jnp.float32).transpose(0, 3, 1, 2)
    loss2 = jax.block_until_ready(multiclass_dice_loss(inp2, tgt2))
    ref2 = jax.block_until_ready(_reference(inp2, tgt2))
    assert jnp.allclose(loss2, ref2, rtol=1e-5, atol=1e-5), (loss2, ref2)

    print("KERNEL_OK")
</pallas_src>

<mosaic_0001>
module attributes {stable_mosaic.version = 11 : i64} {
  func.func @_mdice_kernel(%arg0: i32, %arg1: i32, %arg2: memref<8x256xf32, #tpu.memory_space<vmem>>, %arg3: memref<8x256xf32, #tpu.memory_space<vmem>>, %arg4: memref<8x1xf32, #tpu.memory_space<vmem>>, %arg5: memref<8x1xf32, #tpu.memory_space<vmem>>, %arg6: memref<8x1xf32, #tpu.memory_space<vmem>>) attributes {dimension_semantics = [#tpu.dimension_semantics<parallel>, #tpu.dimension_semantics<arbitrary>], iteration_bounds = array<i64: 1, 1>, scalar_prefetch = 0 : i64, scratch_operands = 2 : i64, tpu.core_type = #tpu.core_type<tc>, window_params = [{transform_indices = @transform_0, window_bounds = array<i64: 8, 256>}, {transform_indices = @transform_1, window_bounds = array<i64: 8, 256>}, {transform_indices = @transform_2, window_bounds = array<i64: 8, 1>}]} {
    %c0_i32 = arith.constant 0 : i32
    %0 = arith.cmpi eq, %arg1, %c0_i32 : i32
    %1 = arith.extui %0 : i1 to i32
    %c0_i32_0 = arith.constant 0 : i32
    %2 = arith.cmpi ne, %1, %c0_i32_0 : i32
    scf.if %2 {
      %cst_15 = arith.constant 0.000000e+00 : f32
      %20 = vector.broadcast %cst_15 : f32 to vector<8x1xf32>
      %c0_16 = arith.constant 0 : index
      %c0_17 = arith.constant 0 : index
      %21 = vector.load %arg5[%c0_16, %c0_17] : memref<8x1xf32, #tpu.memory_space<vmem>>, vector<8x1xf32>
      tpu.vector_store %arg5[%c0_16, %c0_17], %20 {strides = array<i32>} : memref<8x1xf32, #tpu.memory_space<vmem>>, vector<8x1xf32>,
      %cst_18 = arith.constant 0.000000e+00 : f32
      %22 = vector.broadcast %cst_18 : f32 to vector<8x1xf32>
      %c0_19 = arith.constant 0 : index
      %c0_20 = arith.constant 0 : index
      %23 = vector.load %arg6[%c0_19, %c0_20] : memref<8x1xf32, #tpu.memory_space<vmem>>, vector<8x1xf32>
      tpu.vector_store %arg6[%c0_19, %c0_20], %22 {strides = array<i32>} : memref<8x1xf32, #tpu.memory_space<vmem>>, vector<8x1xf32>,
    } else {
    }
    %c0 = arith.constant 0 : index
    %c0_1 = arith.constant 0 : index
    %3 = vector.load %arg2[%c0, %c0_1] : memref<8x256xf32, #tpu.memory_space<vmem>>, vector<8x256xf32>
    %c0_2 = arith.constant 0 : index
    %c0_3 = arith.constant 0 : index
    %4 = vector.load %arg3[%c0_2, %c0_3] : memref<8x256xf32, #tpu.memory_space<vmem>>, vector<8x256xf32>
    %c0_4 = arith.constant 0 : index
    %c0_5 = arith.constant 0 : index
    %5 = vector.load %arg5[%c0_4, %c0_5] : memref<8x1xf32, #tpu.memory_space<vmem>>, vector<8x1xf32>
    %6 = arith.mulf %3, %4 : vector<8x256xf32>
    %cst = arith.constant dense<0.000000e+00> : vector<8xf32>
    %7 = vector.multi_reduction <add>, %6, %cst [1] : vector<8x256xf32> to vector<8xf32>
    %8 = vector.shape_cast %7 : vector<8xf32> to vector<8x1xf32>
    %9 = arith.addf %5, %8 : vector<8x1xf32>
    %c0_6 = arith.constant 0 : index
    %c0_7 = arith.constant 0 : index
    %10 = vector.load %arg5[%c0_6, %c0_7] : memref<8x1xf32, #tpu.memory_space<vmem>>, vector<8x1xf32>
    tpu.vector_store %arg5[%c0_6, %c0_7], %9 {strides = array<i32>} : memref<8x1xf32, #tpu.memory_space<vmem>>, vector<8x1xf32>,
    %c0_8 = arith.constant 0 : index
    %c0_9 = arith.constant 0 : index
    %11 = vector.load %arg6[%c0_8, %c0_9] : memref<8x1xf32, #tpu.memory_space<vmem>>, vector<8x1xf32>
    %12 = arith.addf %3, %4 : vector<8x256xf32>
    %cst_10 = arith.constant dense<0.000000e+00> : vector<8xf32>
    %13 = vector.multi_reduction <add>, %12, %cst_10 [1] : vector<8x256xf32> to vector<8xf32>
    %14 = vector.shape_cast %13 : vector<8xf32> to vector<8x1xf32>
    %15 = arith.addf %11, %14 : vector<8x1xf32>
    %c0_11 = arith.constant 0 : index
    %c0_12 = arith.constant 0 : index
    %16 = vector.load %arg6[%c0_11, %c0_12] : memref<8x1xf32, #tpu.memory_space<vmem>>, vector<8x1xf32>
    tpu.vector_store %arg6[%c0_11, %c0_12], %15 {strides = array<i32>} : memref<8x1xf32, #tpu.memory_space<vmem>>, vector<8x1xf32>,
    %c0_i32_13 = arith.constant 0 : i32
    %17 = arith.cmpi eq, %arg1, %c0_i32_13 : i32
    %18 = arith.extui %17 : i1 to i32
    %c0_i32_14 = arith.constant 0 : i32
    %19 = arith.cmpi ne, %18, %c0_i32_14 : i32
    scf.if %19 {
      %c0_15 = arith.constant 0 : index
      %c0_16 = arith.constant 0 : index
      %20 = vector.load %arg5[%c0_15, %c0_16] : memref<8x1xf32, #tpu.memory_space<vmem>>, vector<8x1xf32>
      %cst_17 = arith.constant 1.000000e+00 : f32
      %21 = vector.broadcast %cst_17 : f32 to vector<8x1xf32>
      %22 = arith.addf %20, %21 : vector<8x1xf32>
      %cst_18 = arith.constant 2.000000e+00 : f32
      %23 = vector.broadcast %cst_18 : f32 to vector<8x1xf32>
      %24 = arith.mulf %23, %22 : vector<8x1xf32>
      %c0_19 = arith.constant 0 : index
      %c0_20 = arith.constant 0 : index
      %25 = vector.load %arg6[%c0_19, %c0_20] : memref<8x1xf32, #tpu.memory_space<vmem>>, vector<8x1xf32>
      %cst_21 = arith.constant 1.000000e+00 : f32
      %26 = vector.broadcast %cst_21 : f32 to vector<8x1xf32>
      %27 = arith.addf %25, %26 : vector<8x1xf32>
      %28 = arith.divf %24, %27 : vector<8x1xf32>
      %c0_22 = arith.constant 0 : index
      %c0_23 = arith.constant 0 : index
      %29 = vector.load %arg4[%c0_22, %c0_23] : memref<8x1xf32, #tpu.memory_space<vmem>>, vector<8x1xf32>
      tpu.vector_store %arg4[%c0_22, %c0_23], %28 {strides = array<i32>} : memref<8x1xf32, #tpu.memory_space<vmem>>, vector<8x1xf32>,
    } else {
    }
    return
  }
  func.func @transform_0(%arg0: i32, %arg1: i32) -> (i32, i32) {
    %c0_i32 = arith.constant 0 : i32
    return %arg0, %arg1 : i32, i32
  }
  func.func @transform_1(%arg0: i32, %arg1: i32) -> (i32, i32) {
    %c0_i32 = arith.constant 0 : i32
    return %arg0, %arg1 : i32, i32
  }
  func.func @transform_2(%arg0: i32, %arg1: i32) -> (i32, i32) {
    %c0_i32 = arith.constant 0 : i32
    %c0_i32_0 = arith.constant 0 : i32
    return %arg0, %c0_i32 : i32, i32
  }
}

</mosaic_0001>

<bundles_post_ra>
// kernel: tpu_custom_call.1
= control target key start
LH: loop header
LB: loop body
LE: loop exit
PB: predicated region body
PF: predicated region fallthrough
CT: control target
= control target key end

     0   :  { %7 = vsyncpa [#allocation5], 0  ;;  %s161_s0 = inlined_call_operand.hbm [shape: f32[8,256], index: 0, kind: input, shape index: {}]   ;;  %s162_s1 = inlined_call_operand.hbm [shape: f32[8,256], index: 1, kind: input, shape index: {}]   ;;  %s163_s2 = inlined_call_operand.vmem [shape: f32[8,1], index: 2, kind: output, shape index: {}]  }
   0x1   :  { %8 = vsyncpa [#allocation7], 0  ;;  %s129_s9 = smov [#allocation4]   ;;  %s130_s11 = smov [#allocation6]  }
   0x2   :  { %s15_s10 = sshll.u32 %s129_s9, 4  ;;  %s25_s12 = sshll.u32 %s130_s11, 4  ;;  %s16_s10 = int_to_ptr.vmem [resolvable:$true] %s15_s10  ;;  %s26_s12 = int_to_ptr.vmem [resolvable:$true] %s25_s12 }
   0x3   :  { %s93_s13 = scalar_lea.vmem %s16_s10, 256  ;;  %p98_p1 = scmp.lt.s32.totalorder %s16_s10, %s16_s10 }
   0x4   :  { %p94_p0 = scmp.ne.s32.totalorder %s16_s10, %s93_s13  ;;  %p99_p2 = scmp.lt.s32.totalorder %s93_s13, %s93_s13 }
   0x6   :  { %p100_p3 = por %p99_p2, %p98_p1 }
   0x8   :  { %p101_p4 = pnand %p100_p3, %p94_p0 }
   0xa   :  { %104 = shalt.err (!%p101_p4)
}
   0xb   :  { %18 = dma.hbm_to_vmem [thread:$0]  %s161_s0, 256, %s16_s10, [#allocation5]  }
   0xc   :  { %s113_s16 = scalar_lea.vmem %s26_s12, 256  ;;  %p118_p6 = scmp.lt.s32.totalorder %s26_s12, %s26_s12 }
   0xd   :  { %p114_p5 = scmp.ne.s32.totalorder %s26_s12, %s113_s16  ;;  %p119_p7 = scmp.lt.s32.totalorder %s113_s16, %s113_s16 }
   0xf   :  { %p120_p8 = por %p119_p7, %p118_p6 }
  0x11   :  { %p121_p9 = pnand %p120_p8, %p114_p5 }
  0x13   :  { %124 = shalt.err (!%p121_p9)
}
  0x14   :  { %28 = dma.hbm_to_vmem [thread:$0]  %s162_s1, 256, %s26_s12, [#allocation7]  }
  0x15   :  { %125 = dma.done.wait [#allocation5], 256  }
  0x16   :  { %126 = vsyncadd [#allocation5], 4294967040 }
  0x17   :  { %127 = dma.done.wait [#allocation7], 256  }
  0x18   :  { %128 = vsyncadd [#allocation7], 4294967040  ;;  %vm39_vm0 = vcmask 7168   ;;  %v131_v0 = vmov 0.0   ;;  %v42_v1 = vld [vmem:[#allocation4] sm:$0xff]  ;;  %v43_v2 = vld [vmem:[#allocation4 + $0x8] sm:$0xff] }
  0x19   :  { %41 = vst.msk [vmem:[#allocation3] sm:$0xff] %vm39_vm0, %v131_v0  ;;  %40 = vst.msk [vmem:[#allocation2] sm:$0xff] %vm39_vm0, %v131_v0  ;;  %v44_v3 = vld [vmem:[#allocation6] sm:$0xff]  ;;  %v45_v4 = vld [vmem:[#allocation6 + $0x8] sm:$0xff] }
  0x1a   :  { %v56_v5 = vadd.f32 %v44_v3, %v42_v1  ;;  %v57_v6 = vadd.f32 %v45_v4, %v43_v2  ;;  %v47_v7 = vmul.f32 %v44_v3, %v42_v1  ;;  %v48_v8 = vmul.f32 %v45_v4, %v43_v2 }
  0x1c   :  { %v58_v9 = vadd.f32 %v57_v6, %v56_v5  ;;  %v49_v10 = vadd.f32 %v48_v8, %v47_v7 }
  0x1e   :  { %59 = vadd.xlane.f32.xlu0 %v58_v9 }
  0x20   :  { %v55_v11 = vld [vmem:[#allocation3] sm:$0xff]  ;;  %v46_v14 = vld [vmem:[#allocation2] sm:$0xff] }
  0x22   :  { %50 = vadd.xlane.f32.xlu0 %v49_v10 }
  0xa7   :  { %v60_v12 = vpop.xlane.xlu0 %59 }
  0xa8   :  { %v61_v13 = vadd.f32 %v60_v12, %v55_v11 }
  0xaa   :  { %62 = vst.msk [vmem:[#allocation3] sm:$0xff] %vm39_vm0, %v61_v13 }
  0xab   :  { %v51_v15 = vpop.xlane.xlu0 %50 }
  0xac   :  { %v52_v16 = vadd.f32 %v51_v15, %v46_v14 }
  0xae   :  { %54 = vst.msk [vmem:[#allocation2] sm:$0xff] %vm39_vm0, %v52_v16 }
  0xb1   :  { %v69_v17 = vld [vmem:[#allocation3] sm:$0xff] }
  0xb2   :  { %v70_v18 = vadd.f32 1.0, %v69_v17 }
  0xb4   :  { %83 = vrcp.f32 %v70_v18 }
  0xb5   :  { %v66_v19 = vld [vmem:[#allocation2] sm:$0xff] }
  0xb6   :  { %v67_v20 = vadd.f32 1.0, %v66_v19 }
  0xb8   :  { %v68_v21 = vmul.f32 2.0, %v67_v20 }
  0xc1   :  { %v84_v22 = vpop.eup %83 }
  0xc2   :  { %v72_v23 = vmul.f32 %v84_v22, %v68_v21 }
  0xc4   :  { %73 = vst.msk [vmem:[%s163_s2] sm:$0xff] %vm39_vm0, %v72_v23 }
  0xc5   :  { %78 = vsyncpa [#allocation5], 1 }
  0xc6   :  { %79 = vsyncpa [#allocation7], 1 }

</bundles_post_ra>
